<compile_context>
chip_gen: v6e
topology: v6e:2x2x1
jax: 0.10.0
libtpu: 0.0.40
codegen_flags: <defaults>
</compile_context>

<pallas_src>
import jax
import jax.numpy as jnp
from jax import lax
from jax.experimental import pallas as pl
from jax.experimental.pallas import tpu as pltpu

H1 = 128
H2 = 64


def _round_up(n, m):
    return ((n + m - 1) // m) * m


def _round_down(n, m):
    return (n // m) * m


def _tpu_info():
    """Best-effort (VMEM capacity, has-2-TensorCores) query; safe fallbacks."""
    vmem_cap = 64 * 1024 * 1024
    try:
        info = pltpu.get_tpu_info()
        vmem_cap = int(getattr(info, "vmem_capacity_bytes", vmem_cap)) or vmem_cap
    except Exception:
        pass
    kind = ""
    try:
        kind = (jax.devices()[0].device_kind or "").lower()
    except Exception:
        pass
    two_cores = "v7" in kind
    return vmem_cap, two_cores


def _choose_block(B, D, x_elem_bytes, vmem_cap, two_cores):
    """Pick a 128-aligned batch tile from a byte budget (trace-time Python)."""
    target_x_bytes = 4 * 1024 * 1024                      # ~4 MiB of x per step
    bb = max(128, _round_down(target_x_bytes // (x_elem_bytes * D), 128))
    # VMEM budget: double-buffered x tile + f32 h1/h2 live values per row.
    per_row = 2 * D * x_elem_bytes + (H1 + H2) * 4 + 4
    bb_vmem = max(128, _round_down((vmem_cap // 3) // per_row, 128))
    bb = min(bb, bb_vmem)
    bb = min(bb, _round_up(B, 128))                        # never over-tile tiny B
    nb = pl.cdiv(B, bb)
    if two_cores:
        # v7x: prefer an even number of grid steps >= 2 so both TCs stay busy.
        if nb < 2 and bb > 128:
            bb = max(128, _round_up(pl.cdiv(B, 2), 128))
            nb = pl.cdiv(B, bb)
        if nb > 1 and nb % 2 == 1:
            bb2 = max(128, _round_up(pl.cdiv(B, nb + 1), 128))
            if pl.cdiv(B, bb2) % 2 == 0:
                bb = bb2
                nb = pl.cdiv(B, bb)
    return bb, nb


def _mlp_kernel(x_ref, w1_ref, w2_ref, w3_ref, b12_ref, b3_ref, o_ref):
    # Layer 1: Linear(D, 128) + ReLU       (Dropout = identity in eval mode)
    h1 = jnp.dot(x_ref[...], w1_ref[...], preferred_element_type=jnp.float32)
    h1 = jnp.maximum(h1 + b12_ref[:, :H1], 0.0)

    # Layer 2: Linear(128, 64) + ReLU      (Dropout = identity in eval mode)
    h2 = jnp.dot(h1.astype(jnp.bfloat16), w2_ref[...],
                 preferred_element_type=jnp.float32)
    h2 = jnp.maximum(h2 + b12_ref[:, H1:], 0.0)

    # Layer 3: Linear(64, 1) + Sigmoid, lane-dense and without materializing h2.T:
    #   z = w3 (1, H2) x h2 (bb, H2) contracted on H2 -> (1, bb)
    z = lax.dot_general(w3_ref[...], h2.astype(jnp.bfloat16),
                        dimension_numbers=(((1,), (1,)), ((), ())),
                        preferred_element_type=jnp.float32)
    z = z + b3_ref[0, 0]                                   # scalar bias from SMEM
    # Exact sigmoid (exp on EUP + exact divide) -- free next to the HBM stream.
    o_ref[...] = (1.0 / (1.0 + jnp.exp(-z))).astype(o_ref.dtype)


@jax.jit
def hi_cola_forward(x, params):
    w1, b1, w2, b2, w3, b3 = params                        # w3 stored as (1, H2) row
    B, D = x.shape

    vmem_cap, two_cores = _tpu_info()
    bb, num_blocks = _choose_block(B, D, 2, vmem_cap, two_cores)  # bf16 x stream

    # bf16 streams; accumulation stays f32 inside the kernel.
    x_bf = x.astype(jnp.bfloat16)
    w1_bf = w1.astype(jnp.bfloat16)
    w2_bf = w2.astype(jnp.bfloat16)
    w3_bf = w3.astype(jnp.bfloat16)

    b12 = jnp.concatenate([b1, b2], axis=1).astype(jnp.float32)   # (1, H1 + H2)
    b3_s = b3.reshape(1, 1).astype(jnp.float32)                   # scalar -> SMEM

    cost = pl.CostEstimate(
        flops=2 * B * (D * H1 + H1 * H2 + H2),
        transcendentals=B,
        bytes_accessed=(B * D + D * H1 + H1 * H2 + H2) * 2
        + (H1 + H2 + 1) * 4
        + num_blocks * bb * 4,
    )

    out = pl.pallas_call(
        _mlp_kernel,
        out_shape=jax.ShapeDtypeStruct((1, num_blocks * bb), jnp.float32),
        grid_spec=pltpu.PrefetchScalarGridSpec(
            num_scalar_prefetch=0,
            grid=(num_blocks,),
            in_specs=[
                pl.BlockSpec((bb, D), lambda i: (i, 0)),           # x tile, full-K
                pl.BlockSpec((D, H1), lambda i: (0, 0)),           # W1 (grid-invariant)
                pl.BlockSpec((H1, H2), lambda i: (0, 0)),          # W2
                pl.BlockSpec((1, H2), lambda i: (0, 0)),           # W3 row
                pl.BlockSpec((1, H1 + H2), lambda i: (0, 0)),      # b1|b2 packed
                pl.BlockSpec(memory_space=pltpu.MemorySpace.SMEM), # b3 scalar
            ],
            out_specs=pl.BlockSpec((1, bb), lambda i: (0, i)),     # lane-dense row
        ),
        compiler_params=pltpu.CompilerParams(
            dimension_semantics=("parallel",),
            vmem_limit_bytes=(40 if two_cores else 64) * 1024 * 1024,
        ),
        cost_estimate=cost,
    )(x_bf, w1_bf, w2_bf, w3_bf, b12, b3_s)

    # (1, num_blocks*bb) -> (B, 1); ragged-edge garbage lanes are discarded here.
    return out[0, :B].reshape(B, 1)


def init_params(key, input_dim):
    """nn.Linear-style init (uniform +-1/sqrt(fan_in)).
    Layer-1/2 weights are stored pre-transposed as (in, out); the final layer's
    weight is stored as a row vector (1, 64) so the kernel computes it
    lane-dense by contracting on h2's last dim."""
    def linear(key, fan_in, fan_out):
        kw, kb = jax.random.split(key)
        bound = 1.0 / jnp.sqrt(fan_in)
        w = jax.random.uniform(kw, (fan_in, fan_out), jnp.float32, -bound, bound)
        b = jax.random.uniform(kb, (1, fan_out), jnp.float32, -bound, bound)
        return w, b

    k1, k2, k3 = jax.random.split(key, 3)
    w1, b1 = linear(k1, input_dim, H1)
    w2, b2 = linear(k2, H1, H2)
    w3c, b3 = linear(k3, H2, 1)
    return (w1, b1, w2, b2, w3c.T, b3)        # w3 stored as (1, H2)


def reference_forward(x, params):
    w1, b1, w2, b2, w3, b3 = params           # w3 is (1, H2)
    h = jnp.maximum(x @ w1 + b1, 0.0)
    h = jnp.maximum(h @ w2 + b2, 0.0)
    return jax.nn.sigmoid(h @ w3.T + b3)


if __name__ == "__main__":
    key = jax.random.PRNGKey(0)
    kx, kp, kx2 = jax.random.split(key, 3)

    # Small shapes consistent with the module: batch=8 samples, input_dim=32.
    batch, input_dim = 8, 32
    x = jax.random.normal(kx, (batch, input_dim), jnp.float32)
    params = init_params(kp, input_dim)

    out = jax.block_until_ready(hi_cola_forward(x, params))
    ref = reference_forward(x, params)
    assert out.shape == (batch, 1), out.shape
    err = jnp.max(jnp.abs(out - ref))
    # tolerance accounts for the bf16 activation/weight streams (f32 accumulate)
    assert err < 2e-2, f"max abs err {err}"

    # Second check: multi-block grid (on 2-TC chips), unaligned D, ragged edge block.
    batch2, input_dim2 = 300, 96
    x2 = jax.random.normal(kx2, (batch2, input_dim2), jnp.float32)
    params2 = init_params(kp, input_dim2)
    out2 = jax.block_until_ready(hi_cola_forward(x2, params2))
    ref2 = reference_forward(x2, params2)
    assert out2.shape == (batch2, 1), out2.shape
    err2 = jnp.max(jnp.abs(out2 - ref2))
    assert err2 < 2e-2, f"max abs err {err2}"

    print("KERNEL_OK")
</pallas_src>

<mosaic_0001>
module attributes {stable_mosaic.version = 11 : i64} {
  func.func @_mlp_kernel(%arg0: i32, %arg1: memref<128x32xbf16, #tpu.memory_space<vmem>>, %arg2: memref<32x128xbf16, #tpu.memory_space<vmem>>, %arg3: memref<128x64xbf16, #tpu.memory_space<vmem>>, %arg4: memref<1x64xbf16, #tpu.memory_space<vmem>>, %arg5: memref<1x192xf32, #tpu.memory_space<vmem>>, %arg6: memref<1x1xf32, #tpu.memory_space<smem>>, %arg7: memref<1x128xf32, #tpu.memory_space<vmem>>) attributes {dimension_semantics = [#tpu.dimension_semantics<parallel>], iteration_bounds = array<i64: 1>, scalar_prefetch = 0 : i64, scratch_operands = 0 : i64, tpu.core_type = #tpu.core_type<tc>, window_params = [{transform_indices = @transform_0, window_bounds = array<i64: 128, 32>}, {pipeline_mode = #tpu.pipeline_mode<synchronous>, transform_indices = @transform_1, window_bounds = array<i64: 32, 128>}, {pipeline_mode = #tpu.pipeline_mode<synchronous>, transform_indices = @transform_2, window_bounds = array<i64: 128, 64>}, {pipeline_mode = #tpu.pipeline_mode<synchronous>, transform_indices = @transform_3, window_bounds = array<i64: 1, 64>}, {pipeline_mode = #tpu.pipeline_mode<synchronous>, transform_indices = @transform_4, window_bounds = array<i64: 1, 192>}, {transform_indices = @transform_5, window_bounds = array<i64: 1, 1>}, {transform_indices = @transform_6, window_bounds = array<i64: 1, 128>}]} {
    %c0 = arith.constant 0 : index
    %c0_0 = arith.constant 0 : index
    %0 = vector.load %arg1[%c0, %c0_0] : memref<128x32xbf16, #tpu.memory_space<vmem>>, vector<128x32xbf16>
    %c0_1 = arith.constant 0 : index
    %c0_2 = arith.constant 0 : index
    %1 = vector.load %arg2[%c0_1, %c0_2] : memref<32x128xbf16, #tpu.memory_space<vmem>>, vector<32x128xbf16>
    %cst = arith.constant dense<0.000000e+00> : vector<128x128xf32>
    %2 = tpu.matmul %0, %1, %cst {dimension_numbers = #tpu.dot_dimension_numbers<[1], [0], [0], [1], [0, 0, 1, 1], [], []>} : vector<128x32xbf16>, vector<32x128xbf16>, vector<128x128xf32> -> vector<128x128xf32>
    %c0_3 = arith.constant 0 : index
    %c0_4 = arith.constant 0 : index
    %3 = vector.load %arg5[%c0_3, %c0_4] : memref<1x192xf32, #tpu.memory_space<vmem>>, vector<1x128xf32>
    %4 = vector.broadcast %3 : vector<1x128xf32> to vector<128x128xf32>
    %5 = arith.addf %2, %4 : vector<128x128xf32>
    %cst_5 = arith.constant 0.000000e+00 : f32
    %6 = vector.broadcast %cst_5 : f32 to vector<128x128xf32>
    %7 = arith.maximumf %5, %6 : vector<128x128xf32>
    %8 = arith.truncf %7 : vector<128x128xf32> to vector<128x128xbf16>
    %c0_6 = arith.constant 0 : index
    %c0_7 = arith.constant 0 : index
    %9 = vector.load %arg3[%c0_6, %c0_7] : memref<128x64xbf16, #tpu.memory_space<vmem>>, vector<128x64xbf16>
    %cst_8 = arith.constant dense<0.000000e+00> : vector<128x64xf32>
    %10 = tpu.matmul %8, %9, %cst_8 {dimension_numbers = #tpu.dot_dimension_numbers<[1], [0], [0], [1], [0, 0, 1, 1], [], []>} : vector<128x128xbf16>, vector<128x64xbf16>, vector<128x64xf32> -> vector<128x64xf32>
    %c0_9 = arith.constant 0 : index
    %c128 = arith.constant 128 : index
    %11 = vector.load %arg5[%c0_9, %c128] : memref<1x192xf32, #tpu.memory_space<vmem>>, vector<1x64xf32>
    %12 = vector.broadcast %11 : vector<1x64xf32> to vector<128x64xf32>
    %13 = arith.addf %10, %12 : vector<128x64xf32>
    %cst_10 = arith.constant 0.000000e+00 : f32
    %14 = vector.broadcast %cst_10 : f32 to vector<128x64xf32>
    %15 = arith.maximumf %13, %14 : vector<128x64xf32>
    %c0_11 = arith.constant 0 : index
    %c0_12 = arith.constant 0 : index
    %16 = vector.load %arg4[%c0_11, %c0_12] : memref<1x64xbf16, #tpu.memory_space<vmem>>, vector<1x64xbf16>
    %17 = arith.truncf %15 : vector<128x64xf32> to vector<128x64xbf16>
    %cst_13 = arith.constant dense<0.000000e+00> : vector<1x128xf32>
    %18 = tpu.matmul %16, %17, %cst_13 {dimension_numbers = #tpu.dot_dimension_numbers<[1], [1], [0], [0], [0, 0, 1, 0], [], []>} : vector<1x64xbf16>, vector<128x64xbf16>, vector<1x128xf32> -> vector<1x128xf32>
    %c0_14 = arith.constant 0 : index
    %c0_15 = arith.constant 0 : index
    %19 = memref.load %arg6[%c0_14, %c0_15] : memref<1x1xf32, #tpu.memory_space<smem>>
    %20 = vector.broadcast %19 : f32 to vector<1x128xf32>
    %21 = arith.addf %18, %20 : vector<1x128xf32>
    %cst_16 = arith.constant 0.000000e+00 : f32
    %22 = vector.broadcast %cst_16 : f32 to vector<1x128xf32>
    %23 = arith.subf %22, %21 : vector<1x128xf32>
    %24 = math.exp %23 : vector<1x128xf32>
    %cst_17 = arith.constant 1.000000e+00 : f32
    %25 = vector.broadcast %cst_17 : f32 to vector<1x128xf32>
    %26 = arith.addf %25, %24 : vector<1x128xf32>
    %cst_18 = arith.constant 1.000000e+00 : f32
    %27 = vector.broadcast %cst_18 : f32 to vector<1x128xf32>
    %28 = arith.divf %27, %26 : vector<1x128xf32>
    %c0_19 = arith.constant 0 : index
    %c0_20 = arith.constant 0 : index
    %29 = vector.load %arg7[%c0_19, %c0_20] : memref<1x128xf32, #tpu.memory_space<vmem>>, vector<1x128xf32>
    tpu.vector_store %arg7[%c0_19, %c0_20], %28 {strides = array<i32>} : memref<1x128xf32, #tpu.memory_space<vmem>>, vector<1x128xf32>,
    return
  }
  func.func @transform_0(%arg0: i32) -> (i32, i32) {
    %c0_i32 = arith.constant 0 : i32
    %c0_i32_0 = arith.constant 0 : i32
    return %arg0, %c0_i32 : i32, i32
  }
  func.func @transform_1(%arg0: i32) -> (i32, i32) {
    %c0_i32 = arith.constant 0 : i32
    %c0_i32_0 = arith.constant 0 : i32
    %c0_i32_1 = arith.constant 0 : i32
    return %c0_i32, %c0_i32_0 : i32, i32
  }
  func.func @transform_2(%arg0: i32) -> (i32, i32) {
    %c0_i32 = arith.constant 0 : i32
    %c0_i32_0 = arith.constant 0 : i32
    %c0_i32_1 = arith.constant 0 : i32
    return %c0_i32, %c0_i32_0 : i32, i32
  }
  func.func @transform_3(%arg0: i32) -> (i32, i32) {
    %c0_i32 = arith.constant 0 : i32
    %c0_i32_0 = arith.constant 0 : i32
    %c0_i32_1 = arith.constant 0 : i32
    return %c0_i32, %c0_i32_0 : i32, i32
  }
  func.func @transform_4(%arg0: i32) -> (i32, i32) {
    %c0_i32 = arith.constant 0 : i32
    %c0_i32_0 = arith.constant 0 : i32
    %c0_i32_1 = arith.constant 0 : i32
    return %c0_i32, %c0_i32_0 : i32, i32
  }
  func.func @transform_5(%arg0: i32) -> (i32, i32) {
    %c0_i32 = arith.constant 0 : i32
    %c0_i32_0 = arith.constant 0 : i32
    %c0_i32_1 = arith.constant 0 : i32
    return %c0_i32, %c0_i32_0 : i32, i32
  }
  func.func @transform_6(%arg0: i32) -> (i32, i32) {
    %c0_i32 = arith.constant 0 : i32
    %c0_i32_0 = arith.constant 0 : i32
    return %c0_i32, %arg0 : i32, i32
  }
}

</mosaic_0001>

<bundles_post_ra>
// kernel: hi_cola_forward.1
= control target key start
LH: loop header
LB: loop body
LE: loop exit
PB: predicated region body
PF: predicated region fallthrough
CT: control target
= control target key end

     0   :  { %vm104_vm0 = vcmask 261120   ;;  %vm685_vm1 = vmmov 0   ;;  %vm445_vm2 = vcmask 523264   ;;  %s840_s1 = inlined_call_operand.vmem [shape: bf16[32,128], index: 1, kind: input, shape index: {}]   ;;  %s841_s0 = inlined_call_operand.vmem [shape: bf16[8,32], index: 0, kind: input, shape index: {}]   ;;  %s842_s2 = inlined_call_operand.vmem [shape: bf16[128,64], index: 2, kind: input, shape index: {}]   ;;  %s843_s4 = inlined_call_operand.vmem [shape: f32[1,192], index: 4, kind: input, shape index: {}]   ;;  %s844_s3 = inlined_call_operand.vmem [shape: bf16[1,64], index: 3, kind: input, shape index: {}]   ;;  %s845_s5 = inlined_call_operand.<no memory space> [shape: f32[1,1], index: 5, kind: input, shape index: {}]   ;;  %s846_s6 = inlined_call_operand.vmem [shape: f32[1,128], index: 6, kind: output, shape index: {}]  }
   0x1   :  { %v662_v0 = vld [vmem:[%s840_s1 + $0x8] sm:$0xff]   ;;  %v663_v1 = vld [vmem:[%s840_s1] sm:$0xff]   ;;  %v666_v4 = vld [vmem:[%s841_s0 + $0x10] sm:$0xff]  }
   0x2   :  { %588 = vmatprep.subr.bf16.mxu1 %v662_v0  ;;  %v664_v2 = vld [vmem:[%s841_s0] sm:$0xff]   ;;  %v665_v3 = vld [vmem:[%s841_s0 + $0x8] sm:$0xff]   ;;  %v672_v5 = vld [vmem:[%s842_s2 + $0x38] sm:$0xff]  }
   0x3   :  { %589 = vmatpush3.bf16.msra.mxu1 %v662_v0  ;;  %592 = vmatprep.mubr.msk.bf16.mxu1 %vm104_vm0, %v664_v2  ;;  %v673_v6 = vld [vmem:[%s842_s2 + $0x30] sm:$0xff]   ;;  %v667_v7 = vld [vmem:[%s841_s0 + $0x18] sm:$0xff]   ;;  %v668_v8 = vld [vmem:[%s841_s0 + $0x20] sm:$0xff]  }
   0x4   :  { %590 = vmatprep.subr.bf16.mxu1 %v663_v1  ;;  %v674_v9 = vld [vmem:[%s842_s2 + $0x28] sm:$0xff]   ;;  %v675_v10 = vld [vmem:[%s842_s2 + $0x20] sm:$0xff]   ;;  %v676_v12 = vld [vmem:[%s842_s2 + $0x18] sm:$0xff]  }
   0x5   :  { %v669_v11 = vld [vmem:[%s841_s0 + $0x28] sm:$0xff]   ;;  %v670_v13 = vld [vmem:[%s841_s0 + $0x30] sm:$0xff]   ;;  %v671_v14 = vld [vmem:[%s841_s0 + $0x38] sm:$0xff]  }
   0x6   :  { %v677_v15 = vld [vmem:[%s842_s2 + $0x10] sm:$0xff]   ;;  %v678_v16 = vld [vmem:[%s842_s2 + $0x8] sm:$0xff]   ;;  %v679_v17 = vld [vmem:[%s842_s2] sm:$0xff]  }
   0x7   :  { %591 = vmatpush3.bf16.msra.mxu1 %v663_v1  ;;  %v524_v20 = vld [vmem:[%s843_s4] ss:$0 sm:$0xff] }
   0x8   :  { %608 = vmatprep.subr.bf16.mxu1 %v672_v5 }
   0xa   :  { %593 = vmatmul.mubr.msk.bf16.vlgmr.msra.gmra.mxu1 %vm104_vm0, %v665_v3 }
   0xb   :  { %596 = vmatprep.mubr.msk.bf16.mxu1 %vm104_vm0, %v666_v4  ;;  %609 = vmatpush3.bf16.msra.mxu1 %v672_v5 }
   0xc   :  { %610 = vmatprep.subr.bf16.mxu1 %v673_v6 }
   0xf   :  { %611 = vmatpush3.bf16.msra.mxu1 %v673_v6 }
  0x10   :  { %612 = vmatprep.subr.bf16.mxu1 %v674_v9 }
  0x12   :  { %597 = vmatmul.mubr.msk.bf16.gmra.mxu1 %vm104_vm0, %v667_v7 }
  0x13   :  { %600 = vmatprep.mubr.msk.bf16.mxu1 %vm104_vm0, %v668_v8  ;;  %613 = vmatpush3.bf16.msra.mxu1 %v674_v9 }
  0x14   :  { %614 = vmatprep.subr.bf16.mxu1 %v675_v10 }
  0x17   :  { %615 = vmatpush3.bf16.msra.mxu1 %v675_v10 }
  0x18   :  { %616 = vmatprep.subr.bf16.mxu1 %v676_v12 }
  0x1a   :  { %601 = vmatmul.mubr.msk.bf16.gmra.mxu1 %vm104_vm0, %v669_v11  ;;  %v684_v11 = vmov 0.0  }
  0x1b   :  { %604 = vmatprep.mubr.msk.bf16.mxu1 %vm104_vm0, %v670_v13  ;;  %617 = vmatpush3.bf16.msra.mxu1 %v676_v12  ;;  %v791_v13 = vld [vmem:[%s843_s4 + $0x1] ss:$0 sm:$0xff] }
  0x1c   :  { %618 = vmatprep.subr.bf16.mxu1 %v677_v15  ;;  %640 = vmatprep.subr.bf16.mxu0 %v684_v11 }
  0x1d   :  { %656 = vmatprep.mubr.msk.bf16.mxu0 %vm685_vm1, %v684_v11 }
  0x1f   :  { %619 = vmatpush3.bf16.msra.mxu1 %v677_v15 }
  0x20   :  { %620 = vmatprep.subr.bf16.mxu1 %v678_v16 }
  0x22   :  { %605 = vmatmul.mubr.msk.bf16.gmra.mxu1 %vm104_vm0, %v671_v14 }
  0x23   :  { %621 = vmatpush3.bf16.msra.mxu1 %v678_v16 }
  0x24   :  { %622 = vmatprep.subr.bf16.mxu1 %v679_v17 }
  0x27   :  { %623 = vmatpush3.bf16.msra.mxu1 %v679_v17 }
  0xca   :  { %v594_v18 = vpop.f32.mrf.mxu1 }
  0xcb   :  { %v172_v24 = vadd.f32 %v594_v18, %v524_v20 }
  0xcc   :  { %v163_v19 = vpop.f32.mrf.mxu1 }
  0xcd   :  { %v164_v22 = vadd.f32 %v524_v20, %v163_v19  ;;  %v228_v31 = vmax.f32 %v172_v24, 0.0 }
  0xce   :  { %v595_v21 = vpop.f32.mrf.mxu1 }
  0xcf   :  { %v175_v23 = vadd.f32 %v595_v21, %v524_v20  ;;  %v226_v29 = vmax.f32 %v164_v22, 0.0 }
  0xd0   :  { %v166_v25 = vpop.f32.mrf.mxu1 }
  0xd1   :  { %v167_v26 = vadd.f32 %v524_v20, %v166_v25  ;;  %v229_v27 = vmax.f32 %v175_v23, 0.0 }
  0xd2   :  { %v598_v28 = vpop.f32.mrf.mxu1 }
  0xd3   :  { %v227_v30 = vmax.f32 %v167_v26, 0.0  ;;  %v243_v34 = vpack.c.bf16 %v229_v27, %v228_v31  ;;  %v188_v38 = vadd.f32 %v598_v28, %v524_v20 }
  0xd4   :  { %v179_v32 = vpop.f32.mrf.mxu1 }
  0xd5   :  { %v242_v33 = vpack.c.bf16 %v227_v30, %v226_v29  ;;  %v180_v36 = vadd.f32 %v524_v20, %v179_v32  ;;  %v232_v45 = vmax.f32 %v188_v38, 0.0 }
  0xd6   :  { %v599_v35 = vpop.f32.mrf.mxu1 }
  0xd7   :  { %v191_v37 = vadd.f32 %v599_v35, %v524_v20  ;;  %624 = vmatprep.mubr.bf16.mxu1 %v242_v33  ;;  %v230_v43 = vmax.f32 %v180_v36, 0.0 }
  0xd8   :  { %v182_v39 = vpop.f32.mrf.mxu1  ;;  %625 = vmatmul.mubr.bf16.vlgmr.msra.gmra.mxu1 %v243_v34 }
  0xd9   :  { %v183_v40 = vadd.f32 %v524_v20, %v182_v39  ;;  %v233_v41 = vmax.f32 %v191_v37, 0.0 }
  0xda   :  { %v602_v42 = vpop.f32.mrf.mxu1 }
  0xdb   :  { %v231_v44 = vmax.f32 %v183_v40, 0.0  ;;  %v245_v48 = vpack.c.bf16 %v233_v41, %v232_v45  ;;  %v204_v52 = vadd.f32 %v602_v42, %v524_v20 }
  0xdc   :  { %v195_v46 = vpop.f32.mrf.mxu1 }
  0xdd   :  { %v244_v47 = vpack.c.bf16 %v231_v44, %v230_v43  ;;  %v196_v50 = vadd.f32 %v524_v20, %v195_v46  ;;  %v236_v59 = vmax.f32 %v204_v52, 0.0 }
  0xde   :  { %v603_v49 = vpop.f32.mrf.mxu1 }
  0xdf   :  { %v207_v51 = vadd.f32 %v603_v49, %v524_v20  ;;  %628 = vmatprep.mubr.bf16.mxu1 %v244_v47  ;;  %v234_v57 = vmax.f32 %v196_v50, 0.0 }
  0xe0   :  { %v198_v53 = vpop.f32.mrf.mxu1  ;;  %629 = vmatmul.mubr.bf16.gmra.mxu1 %v245_v48 }
  0xe1   :  { %v199_v54 = vadd.f32 %v524_v20, %v198_v53  ;;  %v237_v55 = vmax.f32 %v207_v51, 0.0 }
  0xe2   :  { %v606_v56 = vpop.f32.mrf.mxu1 }
  0xe3   :  { %v235_v58 = vmax.f32 %v199_v54, 0.0  ;;  %v247_v62 = vpack.c.bf16 %v237_v55, %v236_v59  ;;  %v220_v2 = vadd.f32 %v606_v56, %v524_v20 }
  0xe4   :  { %v211_v60 = vpop.f32.mrf.mxu1 }
  0xe5   :  { %v246_v61 = vpack.c.bf16 %v235_v58, %v234_v57  ;;  %v212_v0 = vadd.f32 %v524_v20, %v211_v60  ;;  %v240_v8 = vmax.f32 %v220_v2, 0.0 }
  0xe6   :  { %v607_v63 = vpop.f32.mrf.mxu1 }
  0xe7   :  { %v223_v1 = vadd.f32 %v607_v63, %v524_v20  ;;  %632 = vmatprep.mubr.bf16.mxu1 %v246_v61  ;;  %v238_v6 = vmax.f32 %v212_v0, 0.0 }
  0xe8   :  { %v214_v3 = vpop.f32.mrf.mxu1  ;;  %633 = vmatmul.mubr.bf16.gmra.mxu1 %v247_v62 }
  0xe9   :  { %v215_v4 = vadd.f32 %v524_v20, %v214_v3  ;;  %v241_v5 = vmax.f32 %v223_v1, 0.0 }
  0xeb   :  { %v239_v7 = vmax.f32 %v215_v4, 0.0  ;;  %v249_v10 = vpack.c.bf16 %v241_v5, %v240_v8 }
  0xed   :  { %v248_v9 = vpack.c.bf16 %v239_v7, %v238_v6 }
  0xef   :  { %636 = vmatprep.mubr.bf16.mxu1 %v248_v9 }
  0xf0   :  { %637 = vmatmul.mubr.bf16.gmra.mxu1 %v249_v10 }
 0x198   :  { %v626_v12 = vpop.f32.mrf.mxu1 }
 0x199   :  { %v364_v15 = vadd.f32 %v626_v12, %v791_v13 }
 0x19a   :  { %v355_v14 = vpop.f32.mrf.mxu1 }
 0x19b   :  { %v356_v17 = vadd.f32 %v791_v13, %v355_v14  ;;  %v420_v20 = vmax.f32 %v364_v15, 0.0  ;;  %v434_v14 = vld [vmem:[%s844_s3] sm:$0x1]  ;;  %v444_v15 = vstv %s845_s5 }
 0x19c   :  { %v627_v16 = vpop.f32.mrf.mxu1 }
 0x19d   :  { %v367_v18 = vadd.f32 %v627_v16, %v791_v13  ;;  %v418_v24 = vmax.f32 %v356_v17, 0.0 }
 0x19e   :  { %v358_v19 = vpop.f32.mrf.mxu1 }
 0x19f   :  { %v421_v21 = vmax.f32 %v367_v18, 0.0  ;;  %v359_v22 = vadd.f32 %v791_v13, %v358_v19 }
 0x1a0   :  { %v630_v23 = vpop.f32.mrf.mxu1 }
 0x1a1   :  { %v797_v25 = vpack.c.bf16 %v421_v21, %v420_v20  ;;  %v419_v26 = vmax.f32 %v359_v22, 0.0  ;;  %v380_v63 = vadd.f32 %v630_v23, %v791_v13 }
 0x1a2   :  { %v371_v27 = vpop.f32.mrf.mxu1 }
 0x1a3   :  { %v799_v28 = vpack.c.bf16 %v419_v26, %v418_v24  ;;  %v424_v2 = vmax.f32 %v380_v63, 0.0  ;;  %v372_v5 = vadd.f32 %v791_v13, %v371_v27  ;;  %v453_v12 = vsel %vm445_vm2, %v797_v25, 0 }
 0x1a4   :  { %v631_v29 = vpop.f32.mrf.mxu1 }
 0x1a5   :  { %v383_v61 = vadd.f32 %v631_v29, %v791_v13  ;;  %v422_v8 = vmax.f32 %v372_v5, 0.0 }
 0x1a6   :  { %v374_v30 = vpop.f32.mrf.mxu1 }
 0x1a7   :  { %v425_v0 = vmax.f32 %v383_v61, 0.0  ;;  %v375_v4 = vadd.f32 %v791_v13, %v374_v30 }
 0x1a8   :  { %v634_v31 = vpop.f32.mrf.mxu1 }
 0x1a9   :  { %v396_v51 = vadd.f32 %v634_v31, %v791_v13  ;;  %v438_v3 = vpack.c.bf16 %v425_v0, %v424_v2  ;;  %v423_v6 = vmax.f32 %v375_v4, 0.0 }
 0x1aa   :  { %v387_v32 = vpop.f32.mrf.mxu1 }
 0x1ab   :  { %v428_v54 = vmax.f32 %v396_v51, 0.0  ;;  %v388_v57 = vadd.f32 %v791_v13, %v387_v32  ;;  %v459_v7 = vsel %vm445_vm2, %v438_v3, 0  ;;  %v437_v9 = vpack.c.bf16 %v423_v6, %v422_v8 }
 0x1ac   :  { %v635_v33 = vpop.f32.mrf.mxu1 }
 0x1ad   :  { %v399_v49 = vadd.f32 %v635_v33, %v791_v13  ;;  %v426_v60 = vmax.f32 %v388_v57, 0.0  ;;  %v456_v10 = vsel %vm445_vm2, %v437_v9, 0 }
 0x1ae   :  { %v390_v34 = vpop.f32.mrf.mxu1 }
 0x1af   :  { %v429_v52 = vmax.f32 %v399_v49, 0.0  ;;  %v391_v56 = vadd.f32 %v791_v13, %v390_v34 }
 0x1b0   :  { %v638_v35 = vpop.f32.mrf.mxu1 }
 0x1b1   :  { %v412_v37 = vadd.f32 %v638_v35, %v791_v13  ;;  %v440_v55 = vpack.c.bf16 %v429_v52, %v428_v54  ;;  %v427_v58 = vmax.f32 %v391_v56, 0.0 }
 0x1b2   :  { %v403_v36 = vpop.f32.mrf.mxu1 }
 0x1b3   :  { %v432_v41 = vmax.f32 %v412_v37, 0.0  ;;  %v404_v44 = vadd.f32 %v791_v13, %v403_v36  ;;  %v465_v59 = vsel %vm445_vm2, %v440_v55, 0  ;;  %v439_v62 = vpack.c.bf16 %v427_v58, %v426_v60 }
 0x1b4   :  { %v639_v38 = vpop.f32.mrf.mxu1 }
 0x1b5   :  { %v415_v39 = vadd.f32 %v639_v38, %v791_v13  ;;  %v430_v48 = vmax.f32 %v404_v44, 0.0  ;;  %v462_v1 = vsel %vm445_vm2, %v439_v62, 0 }
 0x1b6   :  { %v406_v40 = vpop.f32.mrf.mxu1 }
 0x1b7   :  { %v433_v42 = vmax.f32 %v415_v39, 0.0  ;;  %v407_v43 = vadd.f32 %v791_v13, %v406_v40  ;;  %v450_v13 = vsel %vm445_vm2, %v799_v28, 0 }
 0x1b9   :  { %v442_v45 = vpack.c.bf16 %v433_v42, %v432_v41  ;;  %v431_v46 = vmax.f32 %v407_v43, 0.0 }
 0x1bb   :  { %v471_v47 = vsel %vm445_vm2, %v442_v45, 0  ;;  %v441_v50 = vpack.c.bf16 %v431_v46, %v430_v48 }
 0x1bc   :  { %641 = vmatpush3.bf16.xpose.msra.mxu0 %v471_v47 }
 0x1bd   :  { %642 = vmatprep.subr.bf16.mxu0 %v684_v11  ;;  %v468_v53 = vsel %vm445_vm2, %v441_v50, 0 }
 0x1c4   :  { %643 = vmatpush3.bf16.xpose.msra.mxu0 %v468_v53 }
 0x1c5   :  { %644 = vmatprep.subr.bf16.mxu0 %v684_v11 }
 0x1cc   :  { %645 = vmatpush3.bf16.xpose.msra.mxu0 %v465_v59 }
 0x1cd   :  { %646 = vmatprep.subr.bf16.mxu0 %v684_v11 }
 0x1d4   :  { %647 = vmatpush3.bf16.xpose.msra.mxu0 %v462_v1 }
 0x1d5   :  { %648 = vmatprep.subr.bf16.mxu0 %v684_v11 }
 0x1dc   :  { %649 = vmatpush3.bf16.xpose.msra.mxu0 %v459_v7 }
 0x1dd   :  { %650 = vmatprep.subr.bf16.mxu0 %v684_v11 }
 0x1e4   :  { %651 = vmatpush3.bf16.xpose.msra.mxu0 %v456_v10 }
 0x1e5   :  { %652 = vmatprep.subr.bf16.mxu0 %v684_v11 }
 0x1ec   :  { %653 = vmatpush3.bf16.xpose.msra.mxu0 %v453_v12 }
 0x1ed   :  { %654 = vmatprep.subr.bf16.mxu0 %v684_v11 }
 0x1f4   :  { %655 = vmatpush3.bf16.xpose.msra.mxu0 %v450_v13 }
 0x1fb   :  { %657 = vmatmul.mubr.msk.bf16.vlgmr.msra.gmra.mxu0 %vm445_vm2, %v434_v14 }
 0x2bb   :  { %v507_v16 = vpop.f32.mrf.mxu0 }
 0x2bc   :  { %v508_v17 = vadd.f32 %v507_v16, %v444_v15 }
 0x2bd   :  { %v658_v18 = vpop.f32.mrf.mxu0 }
 0x2be   :  { %v513_v19 = vsub.f32 0.0, %v508_v17 }
 0x2bf   :  { %v510_v20 = vpop.f32.mrf.mxu0 }
 0x2c0   :  { %v514_v11 = vmul.f32 1.442695, %v513_v19 }
 0x2c1   :  { %v659_v21 = vpop.f32.mrf.mxu0 }
 0x2c2   :  { %680 = vpow2.f32 %v514_v11 }
 0x2cf   :  { %v681_v22 = vpop.eup %680 }
 0x2d0   :  { %v516_v23 = vadd.f32 1.0, %v681_v22 }
 0x2d2   :  { %682 = vrcp.f32 %v516_v23 }
 0x2df   :  { %v683_v24 = vpop.eup %682 }
 0x2e0   :  { %519 = vst [vmem:[%s846_s6] sm:$0x1] %v683_v24 }

</bundles_post_ra>
